<compile_context>
chip_gen: v7x
topology: tpu7x:2x2x1
jax: 0.10.0
libtpu: 0.0.40
codegen_flags: <defaults>
</compile_context>

<pallas_src>
import jax
import jax.numpy as jnp
import numpy as np
from jax import lax
from jax.experimental import pallas as pl
from jax.experimental.pallas import tpu as pltpu


def _round_up(a: int, b: int) -> int:
    return (a + b - 1) // b * b


def _nam_kernel(xT_ref, w1_ref, b1_ref, w2t_ref, bias_ref, fout_ref, out_ref):
    xT = xT_ref[...]        # (F, TN)   one batch tile, feature-major, lane-dense in N
    w1 = w1_ref[...]        # (F, U)    first-layer weight (input width 1 collapsed)
    b1 = b1_ref[...]        # (F, U)    first-layer bias
    w2t = w2t_ref[...]      # (F, C, U) output-layer weight, pre-transposed

    # First hidden layer for all features at once (VPU, lane-dense in TN):
    #   h[f, u, n] = ReLU(x[n, f] * W1[f, u] + b1[f, u])
    h = jnp.maximum(xT[:, None, :] * w1[:, :, None] + b1[:, :, None], 0.0)   # (F, U, TN)

    # Output layer, batched over features on the MXU (canonical orientation,
    # contraction over U, lane-dense TN result):
    #   o[f, c, n] = sum_u W2[f, u, c] * h[f, u, n] == (h_f @ W2_f)[n, c]
    o = lax.dot_general(
        w2t, h,
        dimension_numbers=(((2,), (1,)), ((0,), (0,))),
        preferred_element_type=jnp.float32,
    )                                                                        # (F, C, TN)

    fout_ref[...] = o.astype(fout_ref.dtype)
    # Sum over features + global bias: full-width VPU adds on (C, TN).
    out_ref[...] = (jnp.sum(o, axis=0) + bias_ref[...]).astype(out_ref.dtype)


def nam_forward(x, w1, b1, w2, bias, *, block_n: int = 512):
    """NAM forward.

    x: (N, F) float32; w1, b1: (F, U); w2: (F, U, C); bias: (C,)
    Returns (outputs (N, C), f_out (N, C, F)) -- same as the PyTorch module.
    """
    N, F = x.shape
    _, U = w1.shape
    C = w2.shape[-1]

    # Batch tile: multiple of 128 so every load/store is lane-dense & unmasked.
    # 512 fits comfortably on v5e/v6e/v7x; raise toward 1024-2048 on v5e/v6e
    # (128 MiB VMEM) for large N, keep <=512 on v7x (64 MiB VMEM).
    tn = min(block_n, _round_up(N, 128))
    n_pad = _round_up(N, tn)
    grid_n = n_pad // tn

    # One-time layout plumbing (all tiny relative to f_out traffic).
    xT = jnp.transpose(x)                                    # (F, N)
    if n_pad != N:
        xT = jnp.pad(xT, ((0, 0), (0, n_pad - N)))           # (F, Npad)
    w2t = jnp.transpose(w2, (0, 2, 1))                       # (F, C, U)
    bias_2d = bias[:, None]                                  # (C, 1)

    flops = n_pad * F * U * (2 + 2 * C)
    bytes_accessed = 4 * (F * n_pad + 2 * F * U + F * C * U + C
                          + F * C * n_pad + C * n_pad)

    fout_fcn, out_cn = pl.pallas_call(
        _nam_kernel,
        out_shape=(
            jax.ShapeDtypeStruct((F, C, n_pad), jnp.float32),   # f_out (feature-major, lane-dense)
            jax.ShapeDtypeStruct((C, n_pad), jnp.float32),      # summed outputs (+bias)
        ),
        grid_spec=pltpu.PrefetchScalarGridSpec(
            num_scalar_prefetch=0,
            grid=(grid_n,),
            in_specs=[
                pl.BlockSpec((F, tn), lambda i: (0, i)),        # x batch tile
                pl.BlockSpec((F, U), lambda i: (0, 0)),         # W1 (VMEM-resident)
                pl.BlockSpec((F, U), lambda i: (0, 0)),         # b1 (VMEM-resident)
                pl.BlockSpec((F, C, U), lambda i: (0, 0, 0)),   # W2^T (VMEM-resident)
                pl.BlockSpec((C, 1), lambda i: (0, 0)),         # global bias (VMEM-resident)
            ],
            out_specs=[
                pl.BlockSpec((F, C, tn), lambda i: (0, 0, i)),  # f_out tile (lane-dense)
                pl.BlockSpec((C, tn), lambda i: (0, i)),        # outputs tile (lane-dense)
            ],
        ),
        compiler_params=pltpu.CompilerParams(
            dimension_semantics=("parallel",),   # independent batch tiles (uses v7x 2nd TC)
        ),
        cost_estimate=pl.CostEstimate(
            flops=flops, transcendentals=0, bytes_accessed=bytes_accessed),
    )(xT, w1, b1, w2t, bias_2d)

    outputs = jnp.transpose(out_cn[:, :N])                    # (N, C)
    f_out = jnp.transpose(fout_fcn[:, :, :N], (2, 1, 0))      # (N, C, F) == torch.stack(dim=-1)
    return outputs, f_out


def _reference(x, w1, b1, w2, bias):
    # Pure-JAX reference of the same math (per-feature 1->U ReLU layer, U->C linear).
    h = jnp.maximum(x[:, :, None] * w1[None, :, :] + b1[None, :, :], 0.0)    # (N, F, U)
    f_out = jnp.einsum('nfu,fuc->ncf', h, w2)                                # (N, C, F)
    return f_out.sum(-1) + bias[None, :], f_out


if __name__ == "__main__":
    # Small shapes consistent with the module's forward.
    N = 8            # batch
    F = 4            # num_inputs (features)
    U = 64           # num_units (first/only hidden layer, shallow=True)
    C = 3            # num_classes

    key = jax.random.PRNGKey(0)
    kx, kw1, kb1, kw2 = jax.random.split(key, 4)

    x = jax.random.normal(kx, (N, F), dtype=jnp.float32)

    # Deterministic synthetic parameters (shapes from the module's __init__).
    w1 = jax.random.normal(kw1, (F, U), dtype=jnp.float32) * 0.5                    # ReLULayer weight (in=1)
    b1 = jax.random.normal(kb1, (F, U), dtype=jnp.float32) * 0.1                    # ReLULayer bias
    w2 = jax.random.normal(kw2, (F, U, C), dtype=jnp.float32) * (1.0 / np.sqrt(U))  # output_layer (no bias)
    bias = jnp.zeros((C,), dtype=jnp.float32)                                       # NAM global bias (zeros)

    outputs, f_out = jax.block_until_ready(nam_forward(x, w1, b1, w2, bias))

    ref_out, ref_fout = _reference(x, w1, b1, w2, bias)
    np.testing.assert_allclose(np.asarray(outputs), np.asarray(ref_out), rtol=1e-4, atol=1e-4)
    np.testing.assert_allclose(np.asarray(f_out), np.asarray(ref_fout), rtol=1e-4, atol=1e-4)

    print("KERNEL_OK")
</pallas_src>

<mosaic_0001>
module attributes {stable_mosaic.version = 11 : i64} {
  func.func @_nam_kernel(%arg0: i32, %arg1: memref<4x128xf32, #tpu.memory_space<vmem>>, %arg2: memref<4x64xf32, #tpu.memory_space<vmem>>, %arg3: memref<4x64xf32, #tpu.memory_space<vmem>>, %arg4: memref<4x3x64xf32, #tpu.memory_space<vmem>>, %arg5: memref<3x1xf32, #tpu.memory_space<vmem>>, %arg6: memref<4x3x128xf32, #tpu.memory_space<vmem>>, %arg7: memref<3x128xf32, #tpu.memory_space<vmem>>) attributes {dimension_semantics = [#tpu.dimension_semantics<parallel>], iteration_bounds = array<i64: 1>, scalar_prefetch = 0 : i64, scratch_operands = 0 : i64, tpu.core_type = #tpu.core_type<tc>, window_params = [{transform_indices = @transform_0, window_bounds = array<i64: 4, 128>}, {pipeline_mode = #tpu.pipeline_mode<synchronous>, transform_indices = @transform_1, window_bounds = array<i64: 4, 64>}, {pipeline_mode = #tpu.pipeline_mode<synchronous>, transform_indices = @transform_2, window_bounds = array<i64: 4, 64>}, {pipeline_mode = #tpu.pipeline_mode<synchronous>, transform_indices = @transform_3, window_bounds = array<i64: 4, 3, 64>}, {pipeline_mode = #tpu.pipeline_mode<synchronous>, transform_indices = @transform_4, window_bounds = array<i64: 3, 1>}, {transform_indices = @transform_5, window_bounds = array<i64: 4, 3, 128>}, {transform_indices = @transform_6, window_bounds = array<i64: 3, 128>}]} {
    %c0 = arith.constant 0 : index
    %c0_0 = arith.constant 0 : index
    %0 = vector.load %arg1[%c0, %c0_0] : memref<4x128xf32, #tpu.memory_space<vmem>>, vector<4x128xf32>
    %c0_1 = arith.constant 0 : index
    %c0_2 = arith.constant 0 : index
    %1 = vector.load %arg2[%c0_1, %c0_2] : memref<4x64xf32, #tpu.memory_space<vmem>>, vector<4x64xf32>
    %c0_3 = arith.constant 0 : index
    %c0_4 = arith.constant 0 : index
    %2 = vector.load %arg3[%c0_3, %c0_4] : memref<4x64xf32, #tpu.memory_space<vmem>>, vector<4x64xf32>
    %c0_5 = arith.constant 0 : index
    %c0_6 = arith.constant 0 : index
    %c0_7 = arith.constant 0 : index
    %3 = vector.load %arg4[%c0_5, %c0_6, %c0_7] : memref<4x3x64xf32, #tpu.memory_space<vmem>>, vector<4x3x64xf32>
    %4 = vector.shape_cast %0 : vector<4x128xf32> to vector<4x1x128xf32>
    %5 = vector.shape_cast %1 : vector<4x64xf32> to vector<4x64x1xf32>
    %6 = vector.broadcast %4 : vector<4x1x128xf32> to vector<4x64x128xf32>
    %7 = vector.broadcast %5 : vector<4x64x1xf32> to vector<4x64x128xf32>
    %8 = arith.mulf %6, %7 : vector<4x64x128xf32>
    %9 = vector.shape_cast %2 : vector<4x64xf32> to vector<4x64x1xf32>
    %10 = vector.broadcast %9 : vector<4x64x1xf32> to vector<4x64x128xf32>
    %11 = arith.addf %8, %10 : vector<4x64x128xf32>
    %cst = arith.constant 0.000000e+00 : f32
    %12 = vector.broadcast %cst : f32 to vector<4x64x128xf32>
    %13 = arith.maximumf %11, %12 : vector<4x64x128xf32>
    %cst_8 = arith.constant dense<0.000000e+00> : vector<4x3x128xf32>
    %14 = tpu.matmul %3, %13, %cst_8 {dimension_numbers = #tpu.dot_dimension_numbers<[2], [1], [1], [2], [0, 0, 0, 1, 1, 2], [0], [0]>} : vector<4x3x64xf32>, vector<4x64x128xf32>, vector<4x3x128xf32> -> vector<4x3x128xf32>
    %c0_9 = arith.constant 0 : index
    %c0_10 = arith.constant 0 : index
    %c0_11 = arith.constant 0 : index
    %15 = vector.load %arg6[%c0_9, %c0_10, %c0_11] : memref<4x3x128xf32, #tpu.memory_space<vmem>>, vector<4x3x128xf32>
    tpu.vector_store %arg6[%c0_9, %c0_10, %c0_11], %14 {strides = array<i32>} : memref<4x3x128xf32, #tpu.memory_space<vmem>>, vector<4x3x128xf32>,
    %cst_12 = arith.constant dense<0.000000e+00> : vector<3x128xf32>
    %16 = vector.multi_reduction <add>, %14, %cst_12 [0] : vector<4x3x128xf32> to vector<3x128xf32>
    %c0_13 = arith.constant 0 : index
    %c0_14 = arith.constant 0 : index
    %17 = vector.load %arg5[%c0_13, %c0_14] : memref<3x1xf32, #tpu.memory_space<vmem>>, vector<3x1xf32>
    %18 = vector.broadcast %17 : vector<3x1xf32> to vector<3x128xf32>
    %19 = arith.addf %16, %18 : vector<3x128xf32>
    %c0_15 = arith.constant 0 : index
    %c0_16 = arith.constant 0 : index
    %20 = vector.load %arg7[%c0_15, %c0_16] : memref<3x128xf32, #tpu.memory_space<vmem>>, vector<3x128xf32>
    tpu.vector_store %arg7[%c0_15, %c0_16], %19 {strides = array<i32>} : memref<3x128xf32, #tpu.memory_space<vmem>>, vector<3x128xf32>,
    return
  }
  func.func @transform_0(%arg0: i32) -> (i32, i32) {
    %c0_i32 = arith.constant 0 : i32
    %c0_i32_0 = arith.constant 0 : i32
    return %c0_i32, %arg0 : i32, i32
  }
  func.func @transform_1(%arg0: i32) -> (i32, i32) {
    %c0_i32 = arith.constant 0 : i32
    %c0_i32_0 = arith.constant 0 : i32
    %c0_i32_1 = arith.constant 0 : i32
    return %c0_i32, %c0_i32_0 : i32, i32
  }
  func.func @transform_2(%arg0: i32) -> (i32, i32) {
    %c0_i32 = arith.constant 0 : i32
    %c0_i32_0 = arith.constant 0 : i32
    %c0_i32_1 = arith.constant 0 : i32
    return %c0_i32, %c0_i32_0 : i32, i32
  }
  func.func @transform_3(%arg0: i32) -> (i32, i32, i32) {
    %c0_i32 = arith.constant 0 : i32
    %c0_i32_0 = arith.constant 0 : i32
    %c0_i32_1 = arith.constant 0 : i32
    %c0_i32_2 = arith.constant 0 : i32
    return %c0_i32, %c0_i32_0, %c0_i32_1 : i32, i32, i32
  }
  func.func @transform_4(%arg0: i32) -> (i32, i32) {
    %c0_i32 = arith.constant 0 : i32
    %c0_i32_0 = arith.constant 0 : i32
    %c0_i32_1 = arith.constant 0 : i32
    return %c0_i32, %c0_i32_0 : i32, i32
  }
  func.func @transform_5(%arg0: i32) -> (i32, i32, i32) {
    %c0_i32 = arith.constant 0 : i32
    %c0_i32_0 = arith.constant 0 : i32
    %c0_i32_1 = arith.constant 0 : i32
    return %c0_i32, %c0_i32_0, %arg0 : i32, i32, i32
  }
  func.func @transform_6(%arg0: i32) -> (i32, i32) {
    %c0_i32 = arith.constant 0 : i32
    %c0_i32_0 = arith.constant 0 : i32
    return %c0_i32, %arg0 : i32, i32
  }
}

</mosaic_0001>

<bundles_post_ra>
// kernel: tpu_custom_call.1
= control target key start
LH: loop header
LB: loop body
LE: loop exit
PB: predicated region body
PF: predicated region fallthrough
CT: control target
= control target key end

     0   :  { %v42_v0 = vlaneseq  ;;  %v978_v1 = vmov 1966171168   ;;  %s1162_s0 = inlined_call_operand.vmem [shape: f32[4,128], index: 0, kind: input, shape index: {}]   ;;  %s1163_s1 = inlined_call_operand.vmem [shape: f32[4,64], index: 1, kind: input, shape index: {}]   ;;  %s1164_s2 = inlined_call_operand.vmem [shape: f32[4,64], index: 2, kind: input, shape index: {}]   ;;  %s1165_s3 = inlined_call_operand.vmem [shape: f32[4,3,64], index: 3, kind: input, shape index: {}]   ;;  %s1166_s4 = inlined_call_operand.vmem [shape: f32[3,1], index: 4, kind: input, shape index: {}]   ;;  %s1167_s5 = inlined_call_operand.vmem [shape: f32[4,3,128], index: 5, kind: output, shape index: {0}]   ;;  %s1168_s6 = inlined_call_operand.hbm [shape: f32[3,128], index: 6, kind: output, shape index: {1}]  }
   0x1   :  { %v40_v2 = vunpack.c.l.s4 %v978_v1  ;;  %v782_v3 = vld.sshfl [vmem:[%s1162_s0] sm:$0x33 pattern:$0x75316420] }
   0x2   :  { %12 = vsyncpa [#allocation3], 0  ;;  %v1022_v4 = vshrl.u32 %v42_v0, 7  ;;  %v24_v5 = vld [vmem:[%s1163_s1] sm:$0xf]  ;;  %v38_v10 = vcombine.high %v782_v3, %v782_v3  ;;  %v979_v19 = vmov 0.0|0.0  }
   0x3   :  { %v41_v6 = vunpack.c.0.s8 %v40_v2  ;;  %v25_v14 = vld [vmem:[%s1164_s2] sm:$0xf]  ;;  %899 = vmatprep.subr.bf16.mxu0 %v979_v19  ;;  %911 = vmatprep.subr.bf16.mxu1 %v979_v19  ;;  %vm980_vm0 = vmmov 0   ;;  %v981_v30 = vmov 0.0   ;;  %v982_v38 = vmov 0   ;;  %s983_s16 = smov [#allocation2]  }
   0x4   :  { %v92_v7 = vsub.s32 1, %v1022_v4  ;;  %v57_v8 = vsub.s32 0, %v1022_v4  ;;  %v162_v9 = vsub.s32 3, %v1022_v4  ;;  %v127_v27 = vsub.s32 2, %v1022_v4  ;;  %839 = vmatprep.mubr.msk.f32.mxu0 %vm980_vm0, %v981_v30  ;;  %858 = vmatprep.mubr.msk.f32.mxu1 %vm980_vm0, %v981_v30  ;;  %v756_v45 = vld [vmem:[%s1166_s4] sm:$0x7] }
   0x5   :  { %v44_v11 = vsub.s32 %v41_v6, %v1022_v4  ;;  %953 = vset.pattern.permute.xlu0 %v982_v38  ;;  %vm451_vm1 = vcmask 523264   ;;  %vm748_vm2 = vcmask 1042432   ;;  %s772_s17 = sshll.u32 %s983_s16, 4  ;;  %s773_s17 = int_to_ptr.vmem [resolvable:$true] %s772_s17 }
   0x6   :  { %v93_v12 = vrot.slane %v24_v5, %v92_v7  ;;  %v58_v13 = vrot.slane %v24_v5, %v57_v8  ;;  %v1034_v15 = vrot.slane %v24_v5, %v162_v9  ;;  %v1036_v16 = vrot.slane %v25_v14, %v162_v9  ;;  %s954_s18 = scalar_lea.vmem %s773_s17, 64  ;;  %p959_p1 = scmp.lt.s32.totalorder %s773_s17, %s773_s17 }
   0x7   :  { %v52_v17 = vrot.slane %v38_v10, %v44_v11  ;;  %v45_v18 = vrot.slane %v782_v3, %v44_v11  ;;  %v250_v22 = vrot.slane %v25_v14, %v57_v8  ;;  %v285_v23 = vrot.slane %v25_v14, %v92_v7  ;;  %p955_p0 = scmp.ne.s32.totalorder %s773_s17, %s954_s18  ;;  %p960_p2 = scmp.lt.s32.totalorder %s954_s18, %s954_s18 }
   0x8   :  { %95 = vbcast.lane.b32.xlu1 %v93_v12, 256  ;;  %60 = vbcast.lane.b32.xlu0 %v58_v13, 256  ;;  %v128_v29 = vrot.slane %v24_v5, %v127_v27  ;;  %v320_v31 = vrot.slane %v25_v14, %v127_v27 }
   0x9   :  { %v1040_v20 = vrot.slane %v52_v17, %v57_v8  ;;  %v1042_v21 = vrot.slane %v45_v18, %v57_v8  ;;  %v53_v24 = vcombine.high %v45_v18, %v45_v18  ;;  %v54_v26 = vcombine.high %v52_v17, %v52_v17  ;;  %p961_p3 = por %p960_p2, %p959_p1 }
   0xb   :  { %v1044_v25 = vrot.slane %v53_v24, %v57_v8  ;;  %v1047_v28 = vrot.slane %v54_v26, %v57_v8  ;;  %p962_p4 = pnand %p961_p3, %p955_p0 }
   0xc   :  { %99 = vbcast.lane.b32.xlu1 %v93_v12, 264  ;;  %64 = vbcast.lane.b32.xlu0 %v58_v13, 264 }
  0x10   :  { %256 = vbcast.lane.b32.xlu1 %v250_v22, 264  ;;  %252 = vbcast.lane.b32.xlu0 %v250_v22, 256 }
  0x14   :  { %72 = vbcast.lane.b32.xlu1 %v58_v13, 280  ;;  %68 = vbcast.lane.b32.xlu0 %v58_v13, 272 }
  0x18   :  { %291 = vbcast.lane.b32.xlu1 %v285_v23, 264  ;;  %287 = vbcast.lane.b32.xlu0 %v285_v23, 256 }
  0x1c   :  { %107 = vbcast.lane.b32.xlu1 %v93_v12, 280  ;;  %103 = vbcast.lane.b32.xlu0 %v93_v12, 272 }
  0x20   :  { %264 = vbcast.lane.b32.xlu1 %v250_v22, 280  ;;  %260 = vbcast.lane.b32.xlu0 %v250_v22, 272 }
  0x24   :  { %80 = vbcast.lane.b32.xlu1 %v58_v13, 296  ;;  %76 = vbcast.lane.b32.xlu0 %v58_v13, 288 }
  0x28   :  { %299 = vbcast.lane.b32.xlu1 %v285_v23, 280  ;;  %295 = vbcast.lane.b32.xlu0 %v285_v23, 272 }
  0x2c   :  { %115 = vbcast.lane.b32.xlu1 %v93_v12, 296  ;;  %111 = vbcast.lane.b32.xlu0 %v93_v12, 288 }
  0x30   :  { %272 = vbcast.lane.b32.xlu1 %v250_v22, 296  ;;  %268 = vbcast.lane.b32.xlu0 %v250_v22, 288 }
  0x34   :  { %88 = vbcast.lane.b32.xlu1 %v58_v13, 312  ;;  %84 = vbcast.lane.b32.xlu0 %v58_v13, 304 }
  0x38   :  { %307 = vbcast.lane.b32.xlu1 %v285_v23, 296  ;;  %303 = vbcast.lane.b32.xlu0 %v285_v23, 288 }
  0x3c   :  { %123 = vbcast.lane.b32.xlu1 %v93_v12, 312  ;;  %119 = vbcast.lane.b32.xlu0 %v93_v12, 304 }
  0x40   :  { %280 = vbcast.lane.b32.xlu1 %v250_v22, 312  ;;  %276 = vbcast.lane.b32.xlu0 %v250_v22, 304 }
  0x44   :  { %134 = vbcast.lane.b32.xlu1 %v128_v29, 264  ;;  %130 = vbcast.lane.b32.xlu0 %v128_v29, 256 }
  0x48   :  { %315 = vbcast.lane.b32.xlu1 %v285_v23, 312  ;;  %311 = vbcast.lane.b32.xlu0 %v285_v23, 304 }
  0x4c   :  { %169 = vbcast.lane.b32.xlu1 %v1034_v15, 264  ;;  %165 = vbcast.lane.b32.xlu0 %v1034_v15, 256 }
  0x50   :  { %326 = vbcast.lane.b32.xlu1 %v320_v31, 264  ;;  %322 = vbcast.lane.b32.xlu0 %v320_v31, 256 }
  0x54   :  { %142 = vbcast.lane.b32.xlu1 %v128_v29, 280  ;;  %138 = vbcast.lane.b32.xlu0 %v128_v29, 272 }
  0x58   :  { %361 = vbcast.lane.b32.xlu1 %v1036_v16, 264  ;;  %357 = vbcast.lane.b32.xlu0 %v1036_v16, 256 }
  0x5c   :  { %177 = vbcast.lane.b32.xlu1 %v1034_v15, 280  ;;  %173 = vbcast.lane.b32.xlu0 %v1034_v15, 272 }
  0x60   :  { %334 = vbcast.lane.b32.xlu1 %v320_v31, 280  ;;  %330 = vbcast.lane.b32.xlu0 %v320_v31, 272 }
  0x64   :  { %150 = vbcast.lane.b32.xlu1 %v128_v29, 296  ;;  %146 = vbcast.lane.b32.xlu0 %v128_v29, 288 }
  0x68   :  { %369 = vbcast.lane.b32.xlu1 %v1036_v16, 280  ;;  %365 = vbcast.lane.b32.xlu0 %v1036_v16, 272 }
  0x6c   :  { %185 = vbcast.lane.b32.xlu1 %v1034_v15, 296  ;;  %181 = vbcast.lane.b32.xlu0 %v1034_v15, 288 }
  0x70   :  { %342 = vbcast.lane.b32.xlu1 %v320_v31, 296  ;;  %338 = vbcast.lane.b32.xlu0 %v320_v31, 288 }
  0x74   :  { %158 = vbcast.lane.b32.xlu1 %v128_v29, 312  ;;  %154 = vbcast.lane.b32.xlu0 %v128_v29, 304 }
  0x78   :  { %377 = vbcast.lane.b32.xlu1 %v1036_v16, 296  ;;  %373 = vbcast.lane.b32.xlu0 %v1036_v16, 288 }
  0x7a   :  { %v96_v32 = vpop.permute.xlu1 %95  ;;  %v61_v33 = vpop.permute.xlu0 %60 }
  0x7b   :  { %v215_v36 = vmul.f32 %v1042_v21, %v61_v33  ;;  %v223_v49 = vmul.f32 %v1040_v20, %v96_v32 }
  0x7c   :  { %193 = vbcast.lane.b32.xlu1 %v1034_v15, 312  ;;  %189 = vbcast.lane.b32.xlu0 %v1034_v15, 304 }
  0x7e   :  { %v100_v34 = vpop.permute.xlu1 %99  ;;  %v65_v35 = vpop.permute.xlu0 %64 }
  0x7f   :  { %v216_v37 = vmul.f32 %v1042_v21, %v65_v35  ;;  %v224_v50 = vmul.f32 %v1040_v20, %v100_v34 }
  0x80   :  { %350 = vbcast.lane.b32.xlu1 %v320_v31, 312  ;;  %346 = vbcast.lane.b32.xlu0 %v320_v31, 304 }
  0x82   :  { %v257_v39 = vpop.permute.xlu1 %256  ;;  %v253_v40 = vpop.permute.xlu0 %252 }
  0x83   :  { %v388_v41 = vadd.f32 %v257_v39, %v216_v37  ;;  %v387_v42 = vadd.f32 %v253_v40, %v215_v36 }
  0x84   :  { %385 = vbcast.lane.b32.xlu1 %v1036_v16, 312  ;;  %381 = vbcast.lane.b32.xlu0 %v1036_v16, 304 }
  0x85   :  { %v420_v43 = vmax.f32 %v388_v41, 0.0  ;;  %v419_v44 = vmax.f32 %v387_v42, 0.0 }
  0x86   :  { %v73_v46 = vpop.permute.xlu1 %72  ;;  %v69_v47 = vpop.permute.xlu0 %68 }
  0x87   :  { %v900_v48 = vpack.c.bf16 %v420_v43, %v419_v44  ;;  %v218_v60 = vmul.f32 %v1042_v21, %v73_v46  ;;  %v217_v61 = vmul.f32 %v1042_v21, %v69_v47 }
  0x88   :  { %759 = vperm.xlu0 %953, %v756_v45  }
  0x89   :  { %901 = vmatpush3.bf16.msra.mxu0 %v900_v48 }
  0x8a   :  { %v292_v51 = vpop.permute.xlu1 %291  ;;  %v288_v52 = vpop.permute.xlu0 %287  ;;  %902 = vmatprep.subr.bf16.mxu0 %v979_v19 }
  0x8b   :  { %v396_v53 = vadd.f32 %v292_v51, %v224_v50  ;;  %v395_v54 = vadd.f32 %v288_v52, %v223_v49 }
  0x8d   :  { %v428_v55 = vmax.f32 %v396_v53, 0.0  ;;  %v427_v56 = vmax.f32 %v395_v54, 0.0 }
  0x8e   :  { %v108_v57 = vpop.permute.xlu1 %107  ;;  %v104_v58 = vpop.permute.xlu0 %103 }
  0x8f   :  { %v912_v59 = vpack.c.bf16 %v428_v55, %v427_v56  ;;  %v226_v7 = vmul.f32 %v1040_v20, %v108_v57  ;;  %v225_v8 = vmul.f32 %v1040_v20, %v104_v58 }
  0x91   :  { %913 = vmatpush3.bf16.msra.mxu1 %v912_v59 }
  0x92   :  { %v265_v62 = vpop.permute.xlu1 %264  ;;  %v261_v63 = vpop.permute.xlu0 %260  ;;  %914 = vmatprep.subr.bf16.mxu1 %v979_v19 }
  0x93   :  { %v390_v0 = vadd.f32 %v265_v62, %v218_v60  ;;  %v389_v1 = vadd.f32 %v261_v63, %v217_v61 }
  0x95   :  { %v422_v2 = vmax.f32 %v390_v0, 0.0  ;;  %v421_v3 = vmax.f32 %v389_v1, 0.0 }
  0x96   :  { %v81_v4 = vpop.permute.xlu1 %80  ;;  %v77_v5 = vpop.permute.xlu0 %76 }
  0x97   :  { %v903_v6 = vpack.c.bf16 %v422_v2, %v421_v3  ;;  %v220_v18 = vmul.f32 %v1042_v21, %v81_v4  ;;  %v219_v22 = vmul.f32 %v1042_v21, %v77_v5  ;;  %v27_v5 = vld [vmem:[%s1165_s3 + $0x4] sm:$0x7] }
  0x99   :  { %904 = vmatpush3.bf16.msra.mxu0 %v903_v6 }
  0x9a   :  { %v300_v9 = vpop.permute.xlu1 %299  ;;  %v296_v10 = vpop.permute.xlu0 %295  ;;  %905 = vmatprep.subr.bf16.mxu0 %v979_v19 }
  0x9b   :  { %v398_v11 = vadd.f32 %v300_v9, %v226_v7  ;;  %v397_v12 = vadd.f32 %v296_v10, %v225_v8 }
  0x9d   :  { %v430_v13 = vmax.f32 %v398_v11, 0.0  ;;  %v429_v14 = vmax.f32 %v397_v12, 0.0 }
  0x9e   :  { %v116_v15 = vpop.permute.xlu1 %115  ;;  %v112_v16 = vpop.permute.xlu0 %111 }
  0x9f   :  { %v915_v17 = vpack.c.bf16 %v430_v13, %v429_v14  ;;  %v228_v35 = vmul.f32 %v1040_v20, %v116_v15  ;;  %v227_v36 = vmul.f32 %v1040_v20, %v112_v16 }
  0xa1   :  { %916 = vmatpush3.bf16.msra.mxu1 %v915_v17 }
  0xa2   :  { %v273_v23 = vpop.permute.xlu1 %272  ;;  %v269_v24 = vpop.permute.xlu0 %268  ;;  %917 = vmatprep.subr.bf16.mxu1 %v979_v19 }
  0xa3   :  { %v392_v26 = vadd.f32 %v273_v23, %v220_v18  ;;  %v391_v27 = vadd.f32 %v269_v24, %v219_v22 }
  0xa5   :  { %v424_v29 = vmax.f32 %v392_v26, 0.0  ;;  %v423_v31 = vmax.f32 %v391_v27, 0.0 }
  0xa6   :  { %v89_v32 = vpop.permute.xlu1 %88  ;;  %v85_v33 = vpop.permute.xlu0 %84 }
  0xa7   :  { %v906_v34 = vpack.c.bf16 %v424_v29, %v423_v31  ;;  %v222_v46 = vmul.f32 %v1042_v21, %v89_v32  ;;  %v221_v47 = vmul.f32 %v1042_v21, %v85_v33  ;;  %v26_v21 = vld [vmem:[%s1165_s3] sm:$0x7] }
  0xa9   :  { %907 = vmatpush3.bf16.msra.mxu0 %v906_v34 }
  0xaa   :  { %v308_v37 = vpop.permute.xlu1 %307  ;;  %v304_v38 = vpop.permute.xlu0 %303  ;;  %908 = vmatprep.subr.bf16.mxu0 %v979_v19 }
  0xab   :  { %v400_v39 = vadd.f32 %v308_v37, %v228_v35  ;;  %v399_v40 = vadd.f32 %v304_v38, %v227_v36 }
  0xad   :  { %v432_v41 = vmax.f32 %v400_v39, 0.0  ;;  %v431_v42 = vmax.f32 %v399_v40, 0.0 }
  0xae   :  { %v124_v43 = vpop.permute.xlu1 %123  ;;  %v120_v44 = vpop.permute.xlu0 %119 }
  0xaf   :  { %v918_v45 = vpack.c.bf16 %v432_v41, %v431_v42  ;;  %v230_v57 = vmul.f32 %v1040_v20, %v124_v43  ;;  %v229_v58 = vmul.f32 %v1040_v20, %v120_v44 }
  0xb1   :  { %919 = vmatpush3.bf16.msra.mxu1 %v918_v45 }
  0xb2   :  { %v281_v48 = vpop.permute.xlu1 %280  ;;  %v277_v49 = vpop.permute.xlu0 %276  ;;  %920 = vmatprep.subr.bf16.mxu1 %v979_v19 }
  0xb3   :  { %v394_v50 = vadd.f32 %v281_v48, %v222_v46  ;;  %v393_v51 = vadd.f32 %v277_v49, %v221_v47 }
  0xb5   :  { %v426_v52 = vmax.f32 %v394_v50, 0.0  ;;  %v425_v53 = vmax.f32 %v393_v51, 0.0 }
  0xb6   :  { %v135_v54 = vpop.permute.xlu1 %134  ;;  %v131_v55 = vpop.permute.xlu0 %130 }
  0xb7   :  { %v909_v56 = vpack.c.bf16 %v426_v52, %v425_v53  ;;  %v232_v3 = vmul.f32 %v1044_v25, %v135_v54  ;;  %v231_v4 = vmul.f32 %v1044_v25, %v131_v55 }
  0xb9   :  { %910 = vmatpush3.bf16.msra.mxu0 %v909_v56 }
  0xba   :  { %v316_v59 = vpop.permute.xlu1 %315  ;;  %v312_v60 = vpop.permute.xlu0 %311  ;;  %923 = vmatprep.subr.bf16.mxu0 %v979_v19 }
  0xbb   :  { %v402_v61 = vadd.f32 %v316_v59, %v230_v57  ;;  %v401_v62 = vadd.f32 %v312_v60, %v229_v58 }
  0xbc   :  { %840 = vmatmul.mubr.msk.f32.vlgmr.msra.gmra.mrb[0].mxu0 %vm451_vm1, %v26_v21 }
  0xbd   :  { %v434_v63 = vmax.f32 %v402_v61, 0.0  ;;  %v433_v0 = vmax.f32 %v401_v62, 0.0  ;;  %877 = vmatprep.mubr.msk.f32.mxu0 %vm980_vm0, %v981_v30 }
  0xbe   :  { %v170_v20 = vpop.permute.xlu1 %169  ;;  %v166_v1 = vpop.permute.xlu0 %165 }
  0xbf   :  { %v921_v2 = vpack.c.bf16 %v434_v63, %v433_v0  ;;  %v240_v15 = vmul.f32 %v1047_v28, %v170_v20  ;;  %v239_v16 = vmul.f32 %v1047_v28, %v166_v1 }
  0xc1   :  { %922 = vmatpush3.bf16.msra.mxu1 %v921_v2 }
  0xc2   :  { %v327_v6 = vpop.permute.xlu1 %326  ;;  %v323_v7 = vpop.permute.xlu0 %322  ;;  %935 = vmatprep.subr.bf16.mxu1 %v979_v19 }
  0xc3   :  { %v404_v8 = vadd.f32 %v327_v6, %v232_v3  ;;  %v403_v9 = vadd.f32 %v323_v7, %v231_v4 }
  0xc4   :  { %859 = vmatmul.mubr.msk.f32.vlgmr.msra.gmra.mrb[0].mxu1 %vm451_vm1, %v27_v5 }
  0xc5   :  { %v436_v10 = vmax.f32 %v404_v8, 0.0  ;;  %v435_v11 = vmax.f32 %v403_v9, 0.0  ;;  %896 = vmatprep.mubr.msk.f32.mxu1 %vm980_vm0, %v981_v30 }
  0xc6   :  { %v143_v12 = vpop.permute.xlu1 %142  ;;  %v139_v13 = vpop.permute.xlu0 %138 }
  0xc7   :  { %v924_v14 = vpack.c.bf16 %v436_v10, %v435_v11  ;;  %v234_v30 = vmul.f32 %v1044_v25, %v143_v12  ;;  %v233_v32 = vmul.f32 %v1044_v25, %v139_v13 }
  0xc9   :  { %925 = vmatpush3.bf16.msra.mxu0 %v924_v14 }
  0xca   :  { %v362_v17 = vpop.permute.xlu1 %361  ;;  %v358_v18 = vpop.permute.xlu0 %357  ;;  %926 = vmatprep.subr.bf16.mxu0 %v979_v19 }
  0xcb   :  { %v412_v22 = vadd.f32 %v362_v17, %v240_v15  ;;  %v411_v23 = vadd.f32 %v358_v18, %v239_v16 }
  0xcd   :  { %v444_v24 = vmax.f32 %v412_v22, 0.0  ;;  %v443_v26 = vmax.f32 %v411_v23, 0.0 }
  0xce   :  { %v178_v27 = vpop.permute.xlu1 %177  ;;  %v174_v29 = vpop.permute.xlu0 %173 }
  0xcf   :  { %v936_v31 = vpack.c.bf16 %v444_v24, %v443_v26  ;;  %v242_v42 = vmul.f32 %v1047_v28, %v178_v27  ;;  %v241_v43 = vmul.f32 %v1047_v28, %v174_v29 }
  0xd1   :  { %937 = vmatpush3.bf16.msra.mxu1 %v936_v31 }
  0xd2   :  { %v335_v33 = vpop.permute.xlu1 %334  ;;  %v331_v34 = vpop.permute.xlu0 %330  ;;  %938 = vmatprep.subr.bf16.mxu1 %v979_v19 }
  0xd3   :  { %v406_v35 = vadd.f32 %v335_v33, %v234_v30  ;;  %v405_v36 = vadd.f32 %v331_v34, %v233_v32 }
  0xd5   :  { %v438_v37 = vmax.f32 %v406_v35, 0.0  ;;  %v437_v38 = vmax.f32 %v405_v36, 0.0 }
  0xd6   :  { %v151_v39 = vpop.permute.xlu1 %150  ;;  %v147_v40 = vpop.permute.xlu0 %146 }
  0xd7   :  { %v927_v41 = vpack.c.bf16 %v438_v37, %v437_v38  ;;  %v236_v53 = vmul.f32 %v1044_v25, %v151_v39  ;;  %v235_v54 = vmul.f32 %v1044_v25, %v147_v40 }
  0xd9   :  { %928 = vmatpush3.bf16.msra.mxu0 %v927_v41 }
  0xda   :  { %v370_v44 = vpop.permute.xlu1 %369  ;;  %v366_v45 = vpop.permute.xlu0 %365  ;;  %929 = vmatprep.subr.bf16.mxu0 %v979_v19 }
  0xdb   :  { %v414_v46 = vadd.f32 %v370_v44, %v242_v42  ;;  %v413_v47 = vadd.f32 %v366_v45, %v241_v43 }
  0xdd   :  { %v446_v48 = vmax.f32 %v414_v46, 0.0  ;;  %v445_v49 = vmax.f32 %v413_v47, 0.0 }
  0xde   :  { %v186_v50 = vpop.permute.xlu1 %185  ;;  %v182_v51 = vpop.permute.xlu0 %181 }
  0xdf   :  { %v939_v52 = vpack.c.bf16 %v446_v48, %v445_v49  ;;  %v244_v63 = vmul.f32 %v1047_v28, %v186_v50  ;;  %v243_v0 = vmul.f32 %v1047_v28, %v182_v51 }
  0xe1   :  { %940 = vmatpush3.bf16.msra.mxu1 %v939_v52 }
  0xe2   :  { %v343_v55 = vpop.permute.xlu1 %342  ;;  %v339_v56 = vpop.permute.xlu0 %338  ;;  %941 = vmatprep.subr.bf16.mxu1 %v979_v19 }
  0xe3   :  { %v408_v57 = vadd.f32 %v343_v55, %v236_v53  ;;  %v407_v58 = vadd.f32 %v339_v56, %v235_v54 }
  0xe5   :  { %v440_v21 = vmax.f32 %v408_v57, 0.0  ;;  %v439_v59 = vmax.f32 %v407_v58, 0.0 }
  0xe6   :  { %v159_v60 = vpop.permute.xlu1 %158  ;;  %v155_v61 = vpop.permute.xlu0 %154 }
  0xe7   :  { %v930_v62 = vpack.c.bf16 %v440_v21, %v439_v59  ;;  %v238_v9 = vmul.f32 %v1044_v25, %v159_v60  ;;  %v237_v10 = vmul.f32 %v1044_v25, %v155_v61 }
  0xe9   :  { %931 = vmatpush3.bf16.msra.mxu0 %v930_v62 }
  0xea   :  { %v378_v20 = vpop.permute.xlu1 %377  ;;  %v374_v1 = vpop.permute.xlu0 %373  ;;  %932 = vmatprep.subr.bf16.mxu0 %v979_v19 }
  0xeb   :  { %v416_v2 = vadd.f32 %v378_v20, %v244_v63  ;;  %v415_v3 = vadd.f32 %v374_v1, %v243_v0 }
  0xed   :  { %v448_v4 = vmax.f32 %v416_v2, 0.0  ;;  %v447_v5 = vmax.f32 %v415_v3, 0.0 }
  0xee   :  { %v194_v6 = vpop.permute.xlu1 %193  ;;  %v190_v7 = vpop.permute.xlu0 %189 }
  0xef   :  { %v942_v8 = vpack.c.bf16 %v448_v4, %v447_v5  ;;  %v246_v15 = vmul.f32 %v1047_v28, %v194_v6  ;;  %v245_v16 = vmul.f32 %v1047_v28, %v190_v7  ;;  %v29_v28 = vld [vmem:[%s1165_s3 + $0xc] sm:$0x7] }
  0xf1   :  { %943 = vmatpush3.bf16.msra.mxu1 %v942_v8 }
  0xf2   :  { %v351_v11 = vpop.permute.xlu1 %350  ;;  %v347_v12 = vpop.permute.xlu0 %346  ;;  %944 = vmatprep.subr.bf16.mxu1 %v979_v19  ;;  %v28_v19 = vld [vmem:[%s1165_s3 + $0x8] sm:$0x7] }
  0xf3   :  { %v410_v13 = vadd.f32 %v351_v11, %v238_v9  ;;  %v409_v14 = vadd.f32 %v347_v12, %v237_v10 }
  0xf5   :  { %v442_v17 = vmax.f32 %v410_v13, 0.0  ;;  %v441_v18 = vmax.f32 %v409_v14, 0.0 }
  0xf6   :  { %v386_v22 = vpop.permute.xlu1 %385  ;;  %v382_v23 = vpop.permute.xlu0 %381 }
  0xf7   :  { %v933_v24 = vpack.c.bf16 %v442_v17, %v441_v18  ;;  %v418_v26 = vadd.f32 %v386_v22, %v246_v15  ;;  %v417_v27 = vadd.f32 %v382_v23, %v245_v16 }
  0xf9   :  { %v450_v29 = vmax.f32 %v418_v26, 0.0  ;;  %v449_v25 = vmax.f32 %v417_v27, 0.0  ;;  %934 = vmatpush3.bf16.msra.mxu0 %v933_v24 }
  0xfb   :  { %v945_v31 = vpack.c.bf16 %v450_v29, %v449_v25 }
  0xfc   :  { %878 = vmatmul.mubr.msk.f32.vlgmr.msra.gmra.mrb[2].mxu0 %vm451_vm1, %v28_v19 }
  0xfd   :  { %946 = vmatpush3.bf16.msra.mxu1 %v945_v31 }
 0x100   :  { %897 = vmatmul.mubr.msk.f32.vlgmr.msra.gmra.mrb[2].mxu1 %vm451_vm1, %v29_v28 }
 0x107   :  { %v760_v45 = vpop.permute.xlu0 %759 }
 0x18f   :  { %v521_v30 = vpop.f32.mrb[0].mxu0 }
 0x190   :  { %744 = vst [vmem:[%s1167_s5] sm:$0x7] %v521_v30  ;;  %v841_v32 = vpop.f32.mrb[1].mxu0  ;;  %v749_v33 = vsel %vm748_vm2, %v521_v30, 0.0 }
 0x197   :  { %v594_v34 = vpop.f32.mrb[0].mxu1 }
 0x198   :  { %745 = vst [vmem:[%s1167_s5 + $0x4] sm:$0x7] %v594_v34  ;;  %v750_v35 = vsel %vm748_vm2, %v594_v34, 0.0  ;;  %v860_v36 = vpop.f32.mrb[1].mxu1 }
 0x199   :  { %v751_v37 = vadd.f32 %v750_v35, %v749_v33 }
 0x1cf   :  { %v667_v38 = vpop.f32.mrb[2].mxu0 }
 0x1d0   :  { %746 = vst [vmem:[%s1167_s5 + $0x8] sm:$0x7] %v667_v38  ;;  %v752_v39 = vsel %vm748_vm2, %v667_v38, 0.0  ;;  %v879_v40 = vpop.f32.mrb[3].mxu0 }
 0x1d1   :  { %v753_v41 = vadd.f32 %v752_v39, %v751_v37 }
 0x1d3   :  { %v740_v42 = vpop.f32.mrb[2].mxu1 }
 0x1d4   :  { %747 = vst [vmem:[%s1167_s5 + $0xc] sm:$0x7] %v740_v42  ;;  %v754_v43 = vsel %vm748_vm2, %v740_v42, 0.0  ;;  %v898_v44 = vpop.f32.mrb[3].mxu1 }
 0x1d5   :  { %v755_v46 = vadd.f32 %v754_v43, %v753_v41 }
 0x1d7   :  { %v762_v47 = vadd.f32 %v760_v45, %v755_v46 }
 0x1d9   :  { %763 = vst [vmem:[#allocation2] sm:$0x7] %v762_v47 }
 0x1da   :  { %965 = shalt.err (!%p962_p4)
}
 0x1db   :  { %s966_s5 = scalar_lea.hbm %s1168_s6, 64 }
 0x1dc   :  { %p967_p5 = scmp.ne.s32.totalorder %s1168_s6, %s966_s5  ;;  %p970_p6 = scmp.lt.u32.totalorder %s966_s5, %s1168_s6 }
 0x1de   :  { %p972_p7 = pnand %p970_p6, %p967_p5 }
 0x1e0   :  { %975 = shalt.err (!%p972_p7)
}
 0x1e1   :  { %775 = dma.vmem_to_hbm [thread:$0]  %s773_s17, 64, %s1168_s6, [#allocation3]  }
 0x1e2   :  { %976 = dma.done.wait [#allocation3], 64  }
 0x1e3   :  { %977 = vsyncadd [#allocation3], 4294967232 }
 0x1e4   :  { %781 = vsyncpa [#allocation3], 1 }

</bundles_post_ra>
